<compile_context>
chip_gen: v6e
topology: v6e:2x2x1
jax: 0.10.0
libtpu: 0.0.40
codegen_flags: <defaults>
</compile_context>

<pallas_src>
import jax
import jax.numpy as jnp
from jax.experimental import pallas as pl
from jax.experimental.pallas import tpu as pltpu


_LANE = 128
_SUBLANE = 8


def _round_up(x: int, m: int) -> int:
    return (x + m - 1) // m * m


def _cdiv(a: int, b: int) -> int:
    return -(-a // b)


def _linear_leakyrelu_kernel(x_ref, wt_ref, b_ref, o_ref):
    """One batch tile: o = LeakyReLU(x @ W_t + b).

    x_ref:  (block_b, d_in)   pipelined (double-buffered) batch tile
    wt_ref: (d_in, d_out)     whole transposed weight, resident in VMEM
    b_ref:  (1, d_out)        bias, resident in VMEM
    o_ref:  (block_b, d_out)  pipelined output tile (unpadded last dim)
    """
    y = jax.lax.dot_general(
        x_ref[...],
        wt_ref[...],
        dimension_numbers=(((1,), (0,)), ((), ())),   # plain [M,K] @ [K,N]
        preferred_element_type=jnp.float32,
        precision=jax.lax.Precision.HIGHEST,
    )
    y = y + b_ref[...]
    # LeakyReLU, PyTorch default negative_slope = 0.01.
    o_ref[...] = jnp.where(y > 0, y, jnp.float32(0.01) * y).astype(o_ref.dtype)


def simple_reg_prob_forward(x, weight, bias, *, target_block_b=4096):
    """Forward of SimpleRegProb: LeakyReLU(x @ weight.T + bias).

    x:      (B, d_in)     float32 (caller flattens leading dims, like the module)
    weight: (d_out, d_in) PyTorch nn.Linear layout
    bias:   (d_out,)
    returns (B, d_out)    float32
    """
    B, d_in = x.shape
    d_out, d_in_w = weight.shape
    assert d_in_w == d_in and bias.shape == (d_out,)

    x = x.astype(jnp.float32)
    # Pre-transpose once in the wrapper: (d_in, d_out) is the natural MXU RHS.
    w_t = jnp.asarray(weight, jnp.float32).T          # (d_in, d_out)
    b2 = jnp.asarray(bias, jnp.float32).reshape(1, d_out)

    # ---- Resident-weight guard: VMEM layout footprint of W (+ bias), with
    # sublane/lane padding, must stay well under the physical VMEM capacity.
    w_vmem = _round_up(d_in, _SUBLANE) * _round_up(d_out, _LANE) * 4
    bias_vmem = _SUBLANE * _round_up(d_out, _LANE) * 4
    try:
        vmem_cap = int(pltpu.get_tpu_info().vmem_capacity_bytes)
    except Exception:
        vmem_cap = 64 * 1024 * 1024                    # v7x per-TC minimum
    # TODO(synk): if the weight ever approaches ~half of VMEM, switch to an
    # N/K-tiled grid with a VMEM accumulator instead of the resident weight.
    assert w_vmem + bias_vmem <= vmem_cap // 4, (
        "weight too large for VMEM-resident path; add N/K tiling")

    # ---- Batch tiling: pad B only to a multiple of 8, then pick block_b that
    # (nearly) evenly divides it.  Force >= 2 grid steps when possible so a
    # v7x megacore can shard the parallel batch axis across both TCs.
    B_pad8 = _round_up(max(B, 1), _SUBLANE)
    num_tiles = max(1, _cdiv(B_pad8, max(target_block_b, _SUBLANE)))
    if num_tiles == 1 and B_pad8 >= 2 * _SUBLANE:
        num_tiles = 2
    block_b = _round_up(_cdiv(B_pad8, num_tiles), _SUBLANE)
    B_pad = block_b * num_tiles
    if B_pad != B:
        x = jnp.pad(x, ((0, B_pad - B), (0, 0)))

    # ---- VMEM budget: double-buffered x/out tiles (lane-padded layouts), the
    # resident weight/bias, the f32 intermediate, plus headroom.
    x_tile = block_b * _round_up(d_in, _LANE) * 4
    o_tile = block_b * _round_up(d_out, _LANE) * 4
    y_tmp = block_b * _round_up(d_out, _LANE) * 4
    need = 2 * (x_tile + o_tile) + w_vmem + bias_vmem + y_tmp
    vmem_limit = min(max(int(need * 1.5) + (1 << 20), 4 << 20), vmem_cap)

    y_pad = pl.pallas_call(
        _linear_leakyrelu_kernel,
        out_shape=jax.ShapeDtypeStruct((B_pad, d_out), jnp.float32),
        grid_spec=pltpu.PrefetchScalarGridSpec(
            num_scalar_prefetch=0,
            grid=(num_tiles,),
            in_specs=[
                # x: pipelined batch tiles -> DMA overlaps MXU/VPU work.
                pl.BlockSpec((block_b, d_in), lambda i: (i, 0)),
                # weight / bias: whole array resident in VMEM, single buffer.
                pl.BlockSpec(memory_space=pltpu.MemorySpace.VMEM),
                pl.BlockSpec(memory_space=pltpu.MemorySpace.VMEM),
            ],
            out_specs=pl.BlockSpec((block_b, d_out), lambda i: (i, 0)),
        ),
        compiler_params=pltpu.CompilerParams(
            dimension_semantics=("parallel",),   # batch tiles are independent
            vmem_limit_bytes=vmem_limit,
        ),
    )(x, w_t, b2)

    # Only padded rows to drop (no column slice: output was never lane-padded).
    return y_pad[:B]

    # TODO(synk): optional bf16 x / output with f32 accumulation would halve
    # the dominant HBM bytes if the caller tolerates the precision loss.


def _reference_forward(x, weight, bias):
    y = x @ weight.T + bias
    return jnp.where(y > 0, y, 0.01 * y)


if __name__ == "__main__":
    key = jax.random.PRNGKey(0)
    kx, kw, kb, kx2, kx3 = jax.random.split(key, 5)

    # Small shapes consistent with the module: a batch of flattened vectors.
    B, d_in, d_out = 8, 32, 16
    x = jax.random.normal(kx, (B, d_in), dtype=jnp.float32)
    # Deterministic init mimicking nn.Linear's uniform(-1/sqrt(d_in), 1/sqrt(d_in)).
    bound = 1.0 / jnp.sqrt(jnp.float32(d_in))
    weight = jax.random.uniform(kw, (d_out, d_in), minval=-bound, maxval=bound,
                                dtype=jnp.float32)
    bias = jax.random.uniform(kb, (d_out,), minval=-bound, maxval=bound,
                              dtype=jnp.float32)

    y = simple_reg_prob_forward(x, weight, bias)
    jax.block_until_ready(y)
    y_ref = _reference_forward(x, weight, bias)
    assert y.shape == (B, d_out)
    assert jnp.allclose(y, y_ref, atol=1e-4, rtol=1e-4)

    # Ragged batch + small target tile: exercises the multi-step pipelined
    # grid, near-even tile split, and row-pad/slice path.
    B2 = 300
    x2 = jax.random.normal(kx2, (B2, d_in), dtype=jnp.float32)
    y2 = simple_reg_prob_forward(x2, weight, bias, target_block_b=128)
    jax.block_until_ready(y2)
    y2_ref = _reference_forward(x2, weight, bias)
    assert y2.shape == (B2, d_out)
    assert jnp.allclose(y2, y2_ref, atol=1e-4, rtol=1e-4)

    # loss_func-style use: (B, 3, d_in) triplets flattened to rows, as the
    # module does with x.view(-1, d_in); also exercises the ">=2 grid steps"
    # (v7x megacore) path at the default target tile size.
    B3 = 6
    x3 = jax.random.normal(kx3, (B3, 3, d_in), dtype=jnp.float32)
    y3 = simple_reg_prob_forward(x3.reshape(-1, d_in), weight, bias)
    jax.block_until_ready(y3)
    y3_ref = _reference_forward(x3.reshape(-1, d_in), weight, bias)
    assert y3.shape == (B3 * 3, d_out)
    assert jnp.allclose(y3, y3_ref, atol=1e-4, rtol=1e-4)

    # TODO(synk): loss_func / cal_sim / l_CE / l2_loss /
    # similarity_log_gaussian_kernel are training-time utilities, not part of
    # forward(); leave them to plain JAX.
    print("KERNEL_OK")
</pallas_src>

<mosaic_0001>
module attributes {stable_mosaic.version = 11 : i64} {
  func.func @_linear_leakyrelu_kernel(%arg0: i32, %arg1: memref<8x32xf32, #tpu.memory_space<vmem>>, %arg2: memref<32x16xf32, #tpu.memory_space<vmem>>, %arg3: memref<1x16xf32, #tpu.memory_space<vmem>>, %arg4: memref<8x16xf32, #tpu.memory_space<vmem>>) attributes {dimension_semantics = [#tpu.dimension_semantics<parallel>], iteration_bounds = array<i64: 1>, scalar_prefetch = 0 : i64, scratch_operands = 0 : i64, tpu.core_type = #tpu.core_type<tc>, window_params = [{transform_indices = @transform_0, window_bounds = array<i64: 8, 32>}, {pipeline_mode = #tpu.pipeline_mode<synchronous>, transform_indices = @transform_1, window_bounds = array<i64: 32, 16>}, {pipeline_mode = #tpu.pipeline_mode<synchronous>, transform_indices = @transform_2, window_bounds = array<i64: 1, 16>}, {transform_indices = @transform_3, window_bounds = array<i64: 8, 16>}]} {
    %c0 = arith.constant 0 : index
    %c0_0 = arith.constant 0 : index
    %0 = vector.load %arg1[%c0, %c0_0] : memref<8x32xf32, #tpu.memory_space<vmem>>, vector<8x32xf32>
    %c0_1 = arith.constant 0 : index
    %c0_2 = arith.constant 0 : index
    %1 = vector.load %arg2[%c0_1, %c0_2] : memref<32x16xf32, #tpu.memory_space<vmem>>, vector<32x16xf32>
    %cst = arith.constant dense<0.000000e+00> : vector<8x16xf32>
    %2 = tpu.matmul %0, %1, %cst {dimension_numbers = #tpu.dot_dimension_numbers<[1], [0], [0], [1], [0, 0, 1, 1], [], []>, precision = #tpu.contract_precision<fp32>} : vector<8x32xf32>, vector<32x16xf32>, vector<8x16xf32> -> vector<8x16xf32>
    %c0_3 = arith.constant 0 : index
    %c0_4 = arith.constant 0 : index
    %3 = vector.load %arg3[%c0_3, %c0_4] : memref<1x16xf32, #tpu.memory_space<vmem>>, vector<1x16xf32>
    %4 = vector.broadcast %3 : vector<1x16xf32> to vector<8x16xf32>
    %5 = arith.addf %2, %4 : vector<8x16xf32>
    %cst_5 = arith.constant 0.000000e+00 : f32
    %6 = vector.broadcast %cst_5 : f32 to vector<8x16xf32>
    %7 = arith.cmpf ogt, %5, %6 : vector<8x16xf32>
    %cst_6 = arith.constant 0.00999999977 : f32
    %8 = vector.broadcast %cst_6 : f32 to vector<8x16xf32>
    %9 = arith.mulf %8, %5 : vector<8x16xf32>
    %10 = arith.select %7, %5, %9 : vector<8x16xi1>, vector<8x16xf32>
    %c0_7 = arith.constant 0 : index
    %c0_8 = arith.constant 0 : index
    %11 = vector.load %arg4[%c0_7, %c0_8] : memref<8x16xf32, #tpu.memory_space<vmem>>, vector<8x16xf32>
    tpu.vector_store %arg4[%c0_7, %c0_8], %10 {strides = array<i32>} : memref<8x16xf32, #tpu.memory_space<vmem>>, vector<8x16xf32>,
    return
  }
  func.func @transform_0(%arg0: i32) -> (i32, i32) {
    %c0_i32 = arith.constant 0 : i32
    %c0_i32_0 = arith.constant 0 : i32
    return %arg0, %c0_i32 : i32, i32
  }
  func.func @transform_1(%arg0: i32) -> (i32, i32) {
    %c0_i32 = arith.constant 0 : i32
    %c0_i32_0 = arith.constant 0 : i32
    %c0_i32_1 = arith.constant 0 : i32
    return %c0_i32, %c0_i32_0 : i32, i32
  }
  func.func @transform_2(%arg0: i32) -> (i32, i32) {
    %c0_i32 = arith.constant 0 : i32
    %c0_i32_0 = arith.constant 0 : i32
    %c0_i32_1 = arith.constant 0 : i32
    return %c0_i32, %c0_i32_0 : i32, i32
  }
  func.func @transform_3(%arg0: i32) -> (i32, i32) {
    %c0_i32 = arith.constant 0 : i32
    %c0_i32_0 = arith.constant 0 : i32
    return %arg0, %c0_i32 : i32, i32
  }
}

</mosaic_0001>

<bundles_post_ra>
// kernel: tpu_custom_call.1
= control target key start
LH: loop header
LB: loop body
LE: loop exit
PB: predicated region body
PF: predicated region fallthrough
CT: control target
= control target key end

     0   :  { %vm27_vm0 = vcmask 261120   ;;  %v657_v3 = vmov 0.0   ;;  %vm658_vm1 = vmmov 0   ;;  %s767_s0 = inlined_call_operand.vmem [shape: f32[8,32], index: 0, kind: input, shape index: {}]   ;;  %s768_s1 = inlined_call_operand.vmem [shape: f32[32,16], index: 1, kind: input, shape index: {}]   ;;  %s769_s2 = inlined_call_operand.vmem [shape: f32[1,16], index: 2, kind: input, shape index: {}]   ;;  %s770_s3 = inlined_call_operand.hbm [shape: f32[8,16], index: 3, kind: output, shape index: {}]  }
   0x1   :  { %v19_v0 = vld [vmem:[%s768_s1 + $0x18] sm:$0xff]  ;;  %v18_v1 = vld [vmem:[%s768_s1 + $0x10] sm:$0xff]  ;;  %v17_v2 = vld [vmem:[%s768_s1 + $0x8] sm:$0xff]  ;;  %566 = vmatprep.subr.mxu0 %v657_v3  ;;  %577 = vmatprep.subr.mxu1 %v657_v3 }
   0x2   :  { %v690_v4 = vand.u32 4294901760, %v19_v0  ;;  %v692_v5 = vand.u32 4294901760, %v18_v1  ;;  %v694_v6 = vand.u32 4294901760, %v17_v2  ;;  %v16_v7 = vld [vmem:[%s768_s1] sm:$0xff]  ;;  %574 = vmatprep.mubr.msk.f32.mxu0 %vm658_vm1, %v657_v3  ;;  %585 = vmatprep.mubr.msk.f32.mxu1 %vm658_vm1, %v657_v3 }
   0x3   :  { %v15_v8 = vld [vmem:[%s767_s0] sm:$0xff]  ;;  %v703_v9 = vand.u32 4294901760, %v16_v7 }
   0x4   :  { %v29_v10 = vsel %vm27_vm0, %v15_v8, 0 }
   0x5   :  { %8 = vsyncpa [#allocation3], 0  ;;  %567 = vmatpush3.msra.mxu0 %v690_v4  ;;  %v136_v11 = vsub.f32 %v19_v0, %v690_v4  ;;  %v711_v12 = vand.u32 4294901760, %v29_v10  ;;  %v143_v13 = vsub.f32 %v18_v1, %v692_v5  ;;  %v150_v14 = vsub.f32 %v17_v2, %v694_v6  ;;  %v535_v35 = vld [vmem:[%s769_s2] ss:$0 sm:$0xff]  ;;  %s659_s22 = smov [#allocation2]  }
   0x6   :  { %568 = vmatprep.subr.mxu0 %v657_v3  ;;  %v157_v15 = vsub.f32 %v16_v7, %v703_v9  ;;  %s527_s23 = sshll.u32 %s659_s22, 4  ;;  %vm519_vm3 = vcmask 130048   ;;  %s528_s23 = int_to_ptr.vmem [resolvable:$true] %s527_s23 }
   0x7   :  { %569 = vmatpush3.msra.mxu0 %v692_v5  ;;  %v137_v16 = vand.u32 4294901760, %v136_v11  ;;  %v101_v17 = vsub.f32 %v29_v10, %v711_v12  ;;  %v144_v18 = vand.u32 4294901760, %v143_v13  ;;  %v151_v19 = vand.u32 4294901760, %v150_v14  ;;  %s635_s2 = scalar_lea.vmem %s528_s23, 128  ;;  %p640_p1 = scmp.lt.s32.totalorder %s528_s23, %s528_s23 }
   0x8   :  { %570 = vmatprep.subr.mxu0 %v657_v3  ;;  %v158_v20 = vand.u32 4294901760, %v157_v15  ;;  %p636_p0 = scmp.ne.s32.totalorder %s528_s23, %s635_s2  ;;  %p641_p2 = scmp.lt.s32.totalorder %s635_s2, %s635_s2 }
   0x9   :  { %571 = vmatpush3.msra.mxu0 %v694_v6  ;;  %v138_v21 = vsub.f32 %v136_v11, %v137_v16  ;;  %v102_v22 = vand.u32 4294901760, %v101_v17  ;;  %v145_v23 = vsub.f32 %v143_v13, %v144_v18  ;;  %v152_v24 = vsub.f32 %v150_v14, %v151_v19 }
   0xa   :  { %572 = vmatprep.subr.mxu0 %v657_v3  ;;  %v159_v28 = vsub.f32 %v157_v15, %v158_v20  ;;  %p642_p3 = por %p641_p2, %p640_p1 }
   0xb   :  { %573 = vmatpush3.msra.mxu0 %v703_v9  ;;  %v139_v25 = vand.u32 4294901760, %v138_v21  ;;  %v103_v26 = vsub.f32 %v101_v17, %v102_v22  ;;  %v146_v27 = vand.u32 4294901760, %v145_v23  ;;  %v153_v30 = vand.u32 4294901760, %v152_v24 }
   0xc   :  { %588 = vmatprep.subr.mxu0 %v657_v3  ;;  %v160_v31 = vand.u32 4294901760, %v159_v28  ;;  %p643_p4 = pnand %p642_p3, %p636_p0 }
   0xd   :  { %578 = vmatpush3.msra.mxu1 %v139_v25  ;;  %v104_v29 = vand.u32 4294901760, %v103_v26 }
   0xe   :  { %579 = vmatprep.subr.mxu1 %v657_v3 }
   0xf   :  { %575 = vmatmul.mubr.f32.vlgmr.msra.gmra.mxu0 %v104_v29  ;;  %580 = vmatpush3.msra.mxu1 %v146_v27 }
  0x10   :  { %589 = vmatpush3.msra.mxu0 %v136_v11  ;;  %581 = vmatprep.subr.mxu1 %v657_v3 }
  0x11   :  { %590 = vmatprep.subr.mxu0 %v657_v3  ;;  %582 = vmatpush3.msra.mxu1 %v153_v30 }
  0x12   :  { %591 = vmatpush3.msra.mxu0 %v143_v13  ;;  %583 = vmatprep.subr.mxu1 %v657_v3 }
  0x13   :  { %592 = vmatprep.subr.mxu0 %v657_v3  ;;  %584 = vmatpush3.msra.mxu1 %v160_v31 }
  0x14   :  { %593 = vmatpush3.msra.mxu0 %v150_v14  ;;  %586 = vmatmul.mubr.f32.vlgmr.msra.gmra.mxu1 %v711_v12 }
  0x15   :  { %594 = vmatprep.subr.mxu0 %v657_v3  ;;  %599 = vmatprep.subr.mxu1 %v657_v3 }
  0x16   :  { %595 = vmatpush3.msra.mxu0 %v157_v15  ;;  %600 = vmatpush3.msra.mxu1 %v690_v4 }
  0x17   :  { %596 = vmatprep.mubr.msk.f32.mxu0 %vm658_vm1, %v657_v3  ;;  %601 = vmatprep.subr.mxu1 %v657_v3 }
  0x18   :  { %610 = vmatprep.subr.mxu0 %v657_v3  ;;  %597 = vmatmul.mubr.f32.vlgmr.msra.gmra.mxu0 %v101_v17 }
  0x19   :  { %602 = vmatpush3.msra.mxu1 %v692_v5  ;;  %611 = vmatpush3.msra.mxu0 %v137_v16 }
  0x1a   :  { %603 = vmatprep.subr.mxu1 %v657_v3  ;;  %612 = vmatprep.subr.mxu0 %v657_v3 }
  0x1b   :  { %604 = vmatpush3.msra.mxu1 %v694_v6  ;;  %613 = vmatpush3.msra.mxu0 %v144_v18 }
  0x1c   :  { %605 = vmatprep.subr.mxu1 %v657_v3  ;;  %614 = vmatprep.subr.mxu0 %v657_v3 }
  0x1d   :  { %606 = vmatpush3.msra.mxu1 %v703_v9  ;;  %607 = vmatprep.mubr.msk.f32.mxu1 %vm658_vm1, %v657_v3 }
  0x1e   :  { %615 = vmatpush3.msra.mxu0 %v151_v19  ;;  %608 = vmatmul.mubr.f32.vlgmr.msra.gmra.mxu1 %v102_v22 }
  0x1f   :  { %616 = vmatprep.subr.mxu0 %v657_v3  ;;  %621 = vmatprep.subr.mxu1 %v657_v3 }
  0x20   :  { %617 = vmatpush3.msra.mxu0 %v158_v20  ;;  %618 = vmatprep.mubr.msk.f32.mxu0 %vm658_vm1, %v657_v3 }
  0x21   :  { %622 = vmatpush3.msra.mxu1 %v690_v4  ;;  %619 = vmatmul.mubr.f32.vlgmr.msra.gmra.mxu0 %v711_v12 }
  0x22   :  { %623 = vmatprep.subr.mxu1 %v657_v3  ;;  %629 = vmatprep.mubr.msk.f32.mxu1 %vm658_vm1, %v657_v3 }
  0x23   :  { %624 = vmatpush3.msra.mxu1 %v692_v5 }
  0x24   :  { %625 = vmatprep.subr.mxu1 %v657_v3 }
  0x25   :  { %626 = vmatpush3.msra.mxu1 %v694_v6 }
  0x26   :  { %627 = vmatprep.subr.mxu1 %v657_v3 }
  0x27   :  { %628 = vmatpush3.msra.mxu1 %v703_v9 }
  0x28   :  { %630 = vmatmul.mubr.f32.vlgmr.msra.gmra.mxu1 %v711_v12 }
  0xcf   :  { %v106_v32 = vpop.f32.mrf.mxu0 }
  0xd0   :  { %v107_v38 = vadd.f32 %v535_v35, %v106_v32 }
  0xd1   :  { %v576_v33 = vpop.f32.mrf.mxu0 }
  0xd4   :  { %v197_v34 = vpop.f32.mrf.mxu1 }
  0xd5   :  { %v198_v40 = vadd.f32 %v197_v34, %v107_v38 }
  0xd6   :  { %v587_v36 = vpop.f32.mrf.mxu1 }
  0xd8   :  { %v277_v37 = vpop.f32.mrf.mxu0 }
  0xd9   :  { %v278_v43 = vadd.f32 %v277_v37, %v198_v40 }
  0xda   :  { %v598_v39 = vpop.f32.mrf.mxu0 }
  0xde   :  { %v354_v41 = vpop.f32.mrf.mxu1 }
  0xdf   :  { %v355_v45 = vadd.f32 %v354_v41, %v278_v43 }
  0xe0   :  { %v609_v42 = vpop.f32.mrf.mxu1 }
  0xe1   :  { %v437_v44 = vpop.f32.mrf.mxu0 }
  0xe2   :  { %v438_v47 = vadd.f32 %v437_v44, %v355_v45 }
  0xe3   :  { %v620_v46 = vpop.f32.mrf.mxu0 }
  0xe8   :  { %v512_v48 = vpop.f32.mrf.mxu1 }
  0xe9   :  { %v513_v49 = vadd.f32 %v512_v48, %v438_v47 }
  0xea   :  { %v631_v50 = vpop.f32.mrf.mxu1 }
  0xeb   :  { %v517_v51 = vmul.f32 0.01, %v513_v49  ;;  %vm516_vm2 = vcmp.gt.f32.partialorder %v513_v49, 0.0 }
  0xed   :  { %v518_v52 = vsel %vm516_vm2, %v513_v49, %v517_v51 }
  0xee   :  { %520 = vst.msk [vmem:[#allocation2] sm:$0xff] %vm519_vm3, %v518_v52 }
  0xef   :  { %646 = shalt.err (!%p643_p4)
}
  0xf0   :  { %530 = dma.vmem_to_hbm [thread:$0]  %s528_s23, 128, %s770_s3, [#allocation3]  }
  0xf1   :  { %655 = dma.done.wait [#allocation3], 128  }
  0xf2   :  { %656 = vsyncadd [#allocation3], 4294967168 }
  0xf3   :  { %534 = vsyncpa [#allocation3], 1 }

</bundles_post_ra>
